<compile_context>
chip_gen: v7x
topology: tpu7x:2x2x1
jax: 0.10.0
libtpu: 0.0.40
codegen_flags: <defaults>
</compile_context>

<pallas_src>
import jax
import jax.numpy as jnp
from jax import lax
from jax.experimental import pallas as pl
from jax.experimental.pallas import tpu as pltpu


def _make_dwconv_kernel(H, W):
    N = H * W

    def kernel(x_ref, w_ref, b_ref, col_ref, o_ref):
        # x_ref:   (CB, N)  channel tile, full image flattened on the lane axis
        # w_ref:   (CB, 9)  per-channel 3x3 taps, tap index t = kh*3 + kw
        # b_ref:   (CB, 1)  per-channel bias
        # col_ref: (1, N)   int32 column index (n % W), precomputed on host
        # o_ref:   (CB, N)
        x = x_ref[...].astype(jnp.float32)
        w = w_ref[...].astype(jnp.float32)      # all 9 taps loaded once (hoisted)
        b = b_ref[...].astype(jnp.float32)
        col = col_ref[...]                      # (1, N) int32

        # Boundary masks (computed once per tile, reused across taps).
        n_idx = lax.broadcasted_iota(jnp.int32, (1, N), 1)
        row_ok = {-1: n_idx >= W, 0: None, 1: n_idx < (H - 1) * W}
        col_ok = {-1: col >= 1, 0: None, 1: col <= W - 2}

        acc = jnp.zeros(x.shape, jnp.float32)
        for kh in range(3):
            for kw in range(3):
                dh, dw = kh - 1, kw - 1
                shift = dh * W + dw              # want tap[n] = x[n + shift]
                if shift == 0:
                    tap = x
                else:
                    # jnp.roll semantics: roll(x, k)[n] = x[(n - k) % N]
                    tap = pltpu.roll(x, shift=(-shift) % N, axis=1)
                mask = row_ok[dh]
                if col_ok[dw] is not None:
                    mask = col_ok[dw] if mask is None else mask & col_ok[dw]
                if mask is not None:
                    tap = jnp.where(mask, tap, 0.0)
                t = kh * 3 + kw
                acc = acc + tap * w[:, t:t + 1]  # (CB,1) per-channel tap weight
        o_ref[...] = (acc + b).astype(o_ref.dtype)

    return kernel


def _pick_channel_tile(C, N, itemsize, target_block_bytes=2 * 1024 * 1024):
    """Channel tile so one (CB, N) buffer stays ~<=2 MiB (fits v7x VMEM easily)."""
    cb = max(1, target_block_bytes // (N * itemsize))
    if cb >= C:
        return C
    cb = max(8, (cb // 8) * 8)   # keep the sublane (second-minor) dim 8-aligned
    return min(C, cb)


def dwconv_pallas(x, weight, bias, H, W):
    """Depthwise 3x3 conv, pad=1, stride=1, with bias.

    x: (B, N, C) with N == H*W; weight: (3, 3, C); bias: (C,). Returns (B, N, C).
    """
    B, N, C = x.shape
    assert N == H * W, "N must equal H*W"

    # Layout plumbing: put the lane-dense flattened-spatial axis last.
    x_cn = jnp.transpose(x, (0, 2, 1))                   # (B, C, N)
    w_c9 = jnp.transpose(weight.reshape(9, C), (1, 0))   # (C, 9), tap t = kh*3+kw
    b_c1 = bias.reshape(C, 1)                            # (C, 1)
    col_idx = (jnp.arange(N, dtype=jnp.int32) % W).reshape(1, N)

    cb = _pick_channel_tile(C, N, x.dtype.itemsize)
    grid = (B, pl.cdiv(C, cb))

    out = pl.pallas_call(
        _make_dwconv_kernel(H, W),
        out_shape=jax.ShapeDtypeStruct((B, C, N), x.dtype),
        grid_spec=pltpu.PrefetchScalarGridSpec(
            num_scalar_prefetch=0,
            grid=grid,
            in_specs=[
                pl.BlockSpec((pl.Squeezed(), cb, N), lambda b, c: (b, c, 0)),
                pl.BlockSpec((cb, 9), lambda b, c: (c, 0)),
                pl.BlockSpec((cb, 1), lambda b, c: (c, 0)),
                pl.BlockSpec((1, N), lambda b, c: (0, 0)),
            ],
            out_specs=pl.BlockSpec((pl.Squeezed(), cb, N),
                                   lambda b, c: (b, c, 0)),
        ),
        compiler_params=pltpu.CompilerParams(
            dimension_semantics=("parallel", "parallel"),
            vmem_limit_bytes=32 * 1024 * 1024),
    )(x_cn, w_c9, b_c1, col_idx)

    return jnp.transpose(out, (0, 2, 1))                 # back to (B, N, C)


def dwconv_reference(x, weight, bias, H, W):
    """Pure-JAX f32 reference: explicit zero-pad + 9 shifted-window taps."""
    B, N, C = x.shape
    x_nhwc = x.reshape(B, H, W, C).astype(jnp.float32)
    x_pad = jnp.pad(x_nhwc, ((0, 0), (1, 1), (1, 1), (0, 0)))
    y = jnp.zeros((B, H, W, C), jnp.float32)
    for kh in range(3):
        for kw in range(3):
            y = y + x_pad[:, kh:kh + H, kw:kw + W, :] * weight[kh, kw, :].astype(jnp.float32)
    y = y + bias.astype(jnp.float32).reshape(1, 1, 1, C)
    return y.reshape(B, N, C).astype(x.dtype)


if __name__ == "__main__":
    # Small shapes consistent with the module: dim (C) = 4, H = W = 16, B = 2.
    B, C, H, W = 2, 4, 16, 16
    N = H * W

    key = jax.random.PRNGKey(0)
    kx, kw_, kb = jax.random.split(key, 3)

    x = jax.random.normal(kx, (B, N, C), dtype=jnp.float32)
    # Depthwise weight logically (C, 1, 3, 3) -> stored here as (3, 3, C).
    weight = jax.random.normal(kw_, (3, 3, C), dtype=jnp.float32) * 0.1
    bias = jax.random.normal(kb, (C,), dtype=jnp.float32) * 0.1

    out = dwconv_pallas(x, weight, bias, H, W)
    out = jax.block_until_ready(out)

    ref = dwconv_reference(x, weight, bias, H, W)
    assert out.shape == (B, N, C)
    assert jnp.allclose(out, ref, atol=1e-5, rtol=1e-5), "mismatch vs reference"

    print("KERNEL_OK")
</pallas_src>

<mosaic_0001>
module attributes {stable_mosaic.version = 11 : i64} {
  func.func @kernel(%arg0: i32, %arg1: i32, %arg2: memref<1x4x256xf32, #tpu.memory_space<vmem>>, %arg3: memref<4x9xf32, #tpu.memory_space<vmem>>, %arg4: memref<4x1xf32, #tpu.memory_space<vmem>>, %arg5: memref<1x256xi32, #tpu.memory_space<vmem>>, %arg6: memref<1x4x256xf32, #tpu.memory_space<vmem>>) attributes {dimension_semantics = [#tpu.dimension_semantics<parallel>, #tpu.dimension_semantics<parallel>], iteration_bounds = array<i64: 2, 1>, scalar_prefetch = 0 : i64, scratch_operands = 0 : i64, tpu.core_type = #tpu.core_type<tc>, window_params = [{transform_indices = @transform_0, window_bounds = array<i64: 1, 4, 256>}, {transform_indices = @transform_1, window_bounds = array<i64: 4, 9>}, {transform_indices = @transform_2, window_bounds = array<i64: 4, 1>}, {pipeline_mode = #tpu.pipeline_mode<synchronous>, transform_indices = @transform_3, window_bounds = array<i64: 1, 256>}, {transform_indices = @transform_4, window_bounds = array<i64: 1, 4, 256>}]} {
    %c0 = arith.constant 0 : index
    %c0_0 = arith.constant 0 : index
    %c0_1 = arith.constant 0 : index
    %0 = vector.load %arg2[%c0, %c0_0, %c0_1] : memref<1x4x256xf32, #tpu.memory_space<vmem>>, vector<1x4x256xf32>
    %1 = vector.shape_cast %0 : vector<1x4x256xf32> to vector<4x256xf32>
    %c0_2 = arith.constant 0 : index
    %c0_3 = arith.constant 0 : index
    %2 = vector.load %arg3[%c0_2, %c0_3] : memref<4x9xf32, #tpu.memory_space<vmem>>, vector<4x9xf32>
    %c0_4 = arith.constant 0 : index
    %c0_5 = arith.constant 0 : index
    %3 = vector.load %arg4[%c0_4, %c0_5] : memref<4x1xf32, #tpu.memory_space<vmem>>, vector<4x1xf32>
    %c0_6 = arith.constant 0 : index
    %c0_7 = arith.constant 0 : index
    %4 = vector.load %arg5[%c0_6, %c0_7] : memref<1x256xi32, #tpu.memory_space<vmem>>, vector<1x256xi32>
    %5 = tpu.iota {dimensions = array<i32: 1>} : vector<1x256xi32>
    %c16_i32 = arith.constant 16 : i32
    %6 = vector.broadcast %c16_i32 : i32 to vector<1x256xi32>
    %7 = arith.cmpi sge, %5, %6 : vector<1x256xi32>
    %c240_i32 = arith.constant 240 : i32
    %8 = vector.broadcast %c240_i32 : i32 to vector<1x256xi32>
    %9 = arith.cmpi slt, %5, %8 : vector<1x256xi32>
    %c1_i32 = arith.constant 1 : i32
    %10 = vector.broadcast %c1_i32 : i32 to vector<1x256xi32>
    %11 = arith.cmpi sge, %4, %10 : vector<1x256xi32>
    %c14_i32 = arith.constant 14 : i32
    %12 = vector.broadcast %c14_i32 : i32 to vector<1x256xi32>
    %13 = arith.cmpi sle, %4, %12 : vector<1x256xi32>
    %cst = arith.constant 0.000000e+00 : f32
    %14 = vector.broadcast %cst : f32 to vector<4x256xf32>
    %c17_i32 = arith.constant 17 : i32
    %15 = tpu.dynamic_rotate %1 by %c17_i32 dim 1 : vector<4x256xf32>, i32 -> vector<4x256xf32>
    %16 = arith.andi %7, %11 : vector<1x256xi1>
    %cst_8 = arith.constant 0.000000e+00 : f32
    %17 = vector.shape_cast %16 : vector<1x256xi1> to vector<1x256xi1>
    %18 = vector.broadcast %17 : vector<1x256xi1> to vector<4x256xi1>
    %19 = vector.broadcast %cst_8 : f32 to vector<4x256xf32>
    %20 = arith.select %18, %15, %19 : vector<4x256xi1>, vector<4x256xf32>
    %21 = vector.extract_strided_slice %2 {offsets = [0, 0], sizes = [4, 1], strides = [1, 1]} : vector<4x9xf32> to vector<4x1xf32>
    %22 = vector.broadcast %21 : vector<4x1xf32> to vector<4x256xf32>
    %23 = arith.mulf %20, %22 : vector<4x256xf32>
    %24 = arith.addf %14, %23 : vector<4x256xf32>
    %c16_i32_9 = arith.constant 16 : i32
    %25 = tpu.dynamic_rotate %1 by %c16_i32_9 dim 1 : vector<4x256xf32>, i32 -> vector<4x256xf32>
    %cst_10 = arith.constant 0.000000e+00 : f32
    %26 = vector.shape_cast %7 : vector<1x256xi1> to vector<1x256xi1>
    %27 = vector.broadcast %26 : vector<1x256xi1> to vector<4x256xi1>
    %28 = vector.broadcast %cst_10 : f32 to vector<4x256xf32>
    %29 = arith.select %27, %25, %28 : vector<4x256xi1>, vector<4x256xf32>
    %30 = vector.extract_strided_slice %2 {offsets = [0, 1], sizes = [4, 1], strides = [1, 1]} : vector<4x9xf32> to vector<4x1xf32>
    %31 = vector.broadcast %30 : vector<4x1xf32> to vector<4x256xf32>
    %32 = arith.mulf %29, %31 : vector<4x256xf32>
    %33 = arith.addf %24, %32 : vector<4x256xf32>
    %c15_i32 = arith.constant 15 : i32
    %34 = tpu.dynamic_rotate %1 by %c15_i32 dim 1 : vector<4x256xf32>, i32 -> vector<4x256xf32>
    %35 = arith.andi %7, %13 : vector<1x256xi1>
    %cst_11 = arith.constant 0.000000e+00 : f32
    %36 = vector.shape_cast %35 : vector<1x256xi1> to vector<1x256xi1>
    %37 = vector.broadcast %36 : vector<1x256xi1> to vector<4x256xi1>
    %38 = vector.broadcast %cst_11 : f32 to vector<4x256xf32>
    %39 = arith.select %37, %34, %38 : vector<4x256xi1>, vector<4x256xf32>
    %40 = vector.extract_strided_slice %2 {offsets = [0, 2], sizes = [4, 1], strides = [1, 1]} : vector<4x9xf32> to vector<4x1xf32>
    %41 = vector.broadcast %40 : vector<4x1xf32> to vector<4x256xf32>
    %42 = arith.mulf %39, %41 : vector<4x256xf32>
    %43 = arith.addf %33, %42 : vector<4x256xf32>
    %c1_i32_12 = arith.constant 1 : i32
    %44 = tpu.dynamic_rotate %1 by %c1_i32_12 dim 1 : vector<4x256xf32>, i32 -> vector<4x256xf32>
    %cst_13 = arith.constant 0.000000e+00 : f32
    %45 = vector.shape_cast %11 : vector<1x256xi1> to vector<1x256xi1>
    %46 = vector.broadcast %45 : vector<1x256xi1> to vector<4x256xi1>
    %47 = vector.broadcast %cst_13 : f32 to vector<4x256xf32>
    %48 = arith.select %46, %44, %47 : vector<4x256xi1>, vector<4x256xf32>
    %49 = vector.extract_strided_slice %2 {offsets = [0, 3], sizes = [4, 1], strides = [1, 1]} : vector<4x9xf32> to vector<4x1xf32>
    %50 = vector.broadcast %49 : vector<4x1xf32> to vector<4x256xf32>
    %51 = arith.mulf %48, %50 : vector<4x256xf32>
    %52 = arith.addf %43, %51 : vector<4x256xf32>
    %53 = vector.extract_strided_slice %2 {offsets = [0, 4], sizes = [4, 1], strides = [1, 1]} : vector<4x9xf32> to vector<4x1xf32>
    %54 = vector.broadcast %53 : vector<4x1xf32> to vector<4x256xf32>
    %55 = arith.mulf %1, %54 : vector<4x256xf32>
    %56 = arith.addf %52, %55 : vector<4x256xf32>
    %c255_i32 = arith.constant 255 : i32
    %57 = tpu.dynamic_rotate %1 by %c255_i32 dim 1 : vector<4x256xf32>, i32 -> vector<4x256xf32>
    %cst_14 = arith.constant 0.000000e+00 : f32
    %58 = vector.shape_cast %13 : vector<1x256xi1> to vector<1x256xi1>
    %59 = vector.broadcast %58 : vector<1x256xi1> to vector<4x256xi1>
    %60 = vector.broadcast %cst_14 : f32 to vector<4x256xf32>
    %61 = arith.select %59, %57, %60 : vector<4x256xi1>, vector<4x256xf32>
    %62 = vector.extract_strided_slice %2 {offsets = [0, 5], sizes = [4, 1], strides = [1, 1]} : vector<4x9xf32> to vector<4x1xf32>
    %63 = vector.broadcast %62 : vector<4x1xf32> to vector<4x256xf32>
    %64 = arith.mulf %61, %63 : vector<4x256xf32>
    %65 = arith.addf %56, %64 : vector<4x256xf32>
    %c241_i32 = arith.constant 241 : i32
    %66 = tpu.dynamic_rotate %1 by %c241_i32 dim 1 : vector<4x256xf32>, i32 -> vector<4x256xf32>
    %67 = arith.andi %9, %11 : vector<1x256xi1>
    %cst_15 = arith.constant 0.000000e+00 : f32
    %68 = vector.shape_cast %67 : vector<1x256xi1> to vector<1x256xi1>
    %69 = vector.broadcast %68 : vector<1x256xi1> to vector<4x256xi1>
    %70 = vector.broadcast %cst_15 : f32 to vector<4x256xf32>
    %71 = arith.select %69, %66, %70 : vector<4x256xi1>, vector<4x256xf32>
    %72 = vector.extract_strided_slice %2 {offsets = [0, 6], sizes = [4, 1], strides = [1, 1]} : vector<4x9xf32> to vector<4x1xf32>
    %73 = vector.broadcast %72 : vector<4x1xf32> to vector<4x256xf32>
    %74 = arith.mulf %71, %73 : vector<4x256xf32>
    %75 = arith.addf %65, %74 : vector<4x256xf32>
    %c240_i32_16 = arith.constant 240 : i32
    %76 = tpu.dynamic_rotate %1 by %c240_i32_16 dim 1 : vector<4x256xf32>, i32 -> vector<4x256xf32>
    %cst_17 = arith.constant 0.000000e+00 : f32
    %77 = vector.shape_cast %9 : vector<1x256xi1> to vector<1x256xi1>
    %78 = vector.broadcast %77 : vector<1x256xi1> to vector<4x256xi1>
    %79 = vector.broadcast %cst_17 : f32 to vector<4x256xf32>
    %80 = arith.select %78, %76, %79 : vector<4x256xi1>, vector<4x256xf32>
    %81 = vector.extract_strided_slice %2 {offsets = [0, 7], sizes = [4, 1], strides = [1, 1]} : vector<4x9xf32> to vector<4x1xf32>
    %82 = vector.broadcast %81 : vector<4x1xf32> to vector<4x256xf32>
    %83 = arith.mulf %80, %82 : vector<4x256xf32>
    %84 = arith.addf %75, %83 : vector<4x256xf32>
    %c239_i32 = arith.constant 239 : i32
    %85 = tpu.dynamic_rotate %1 by %c239_i32 dim 1 : vector<4x256xf32>, i32 -> vector<4x256xf32>
    %86 = arith.andi %9, %13 : vector<1x256xi1>
    %cst_18 = arith.constant 0.000000e+00 : f32
    %87 = vector.shape_cast %86 : vector<1x256xi1> to vector<1x256xi1>
    %88 = vector.broadcast %87 : vector<1x256xi1> to vector<4x256xi1>
    %89 = vector.broadcast %cst_18 : f32 to vector<4x256xf32>
    %90 = arith.select %88, %85, %89 : vector<4x256xi1>, vector<4x256xf32>
    %91 = vector.extract_strided_slice %2 {offsets = [0, 8], sizes = [4, 1], strides = [1, 1]} : vector<4x9xf32> to vector<4x1xf32>
    %92 = vector.broadcast %91 : vector<4x1xf32> to vector<4x256xf32>
    %93 = arith.mulf %90, %92 : vector<4x256xf32>
    %94 = arith.addf %84, %93 : vector<4x256xf32>
    %95 = vector.broadcast %3 : vector<4x1xf32> to vector<4x256xf32>
    %96 = arith.addf %94, %95 : vector<4x256xf32>
    %c0_19 = arith.constant 0 : index
    %c0_20 = arith.constant 0 : index
    %c0_21 = arith.constant 0 : index
    %97 = vector.load %arg6[%c0_19, %c0_20, %c0_21] : memref<1x4x256xf32, #tpu.memory_space<vmem>>, vector<1x4x256xf32>
    %98 = vector.shape_cast %97 : vector<1x4x256xf32> to vector<4x256xf32>
    %99 = vector.shape_cast %96 : vector<4x256xf32> to vector<1x4x256xf32>
    tpu.vector_store %arg6[%c0_19, %c0_20, %c0_21], %99 {strides = array<i32>} : memref<1x4x256xf32, #tpu.memory_space<vmem>>, vector<1x4x256xf32>,
    return
  }
  func.func @transform_0(%arg0: i32, %arg1: i32) -> (i32, i32, i32) {
    %c0_i32 = arith.constant 0 : i32
    %c0_i32_0 = arith.constant 0 : i32
    return %arg0, %arg1, %c0_i32 : i32, i32, i32
  }
  func.func @transform_1(%arg0: i32, %arg1: i32) -> (i32, i32) {
    %c0_i32 = arith.constant 0 : i32
    %c0_i32_0 = arith.constant 0 : i32
    return %arg1, %c0_i32 : i32, i32
  }
  func.func @transform_2(%arg0: i32, %arg1: i32) -> (i32, i32) {
    %c0_i32 = arith.constant 0 : i32
    %c0_i32_0 = arith.constant 0 : i32
    return %arg1, %c0_i32 : i32, i32
  }
  func.func @transform_3(%arg0: i32, %arg1: i32) -> (i32, i32) {
    %c0_i32 = arith.constant 0 : i32
    %c0_i32_0 = arith.constant 0 : i32
    %c0_i32_1 = arith.constant 0 : i32
    return %c0_i32, %c0_i32_0 : i32, i32
  }
  func.func @transform_4(%arg0: i32, %arg1: i32) -> (i32, i32, i32) {
    %c0_i32 = arith.constant 0 : i32
    %c0_i32_0 = arith.constant 0 : i32
    return %arg0, %arg1, %c0_i32 : i32, i32, i32
  }
}

</mosaic_0001>

<bundles_post_ra>
// kernel: tpu_custom_call.1
= control target key start
LH: loop header
LB: loop body
LE: loop exit
PB: predicated region body
PF: predicated region fallthrough
CT: control target
= control target key end

     0   :  { %9 = vsyncpa [#allocation3], 0  ;;  %s1322_s0 = inlined_call_operand.hbm [shape: f32[2,4,256], index: 0, kind: input, shape index: {}]   ;;  %s1323_s1 = inlined_call_operand.vmem [shape: f32[4,9], index: 1, kind: input, shape index: {}]   ;;  %s1324_s2 = inlined_call_operand.vmem [shape: f32[4,1], index: 2, kind: input, shape index: {}]   ;;  %s1325_s3 = inlined_call_operand.vmem [shape: s32[1,256], index: 3, kind: input, shape index: {}]   ;;  %s1326_s4 = inlined_call_operand.hbm [shape: f32[2,4,256], index: 4, kind: output, shape index: {}]  }
   0x1   :  { %11 = vsyncpa [#allocation3 + $0x1], 0 }
   0x2   :  { %12 = vsyncpa [#allocation4], 0 }
   0x3   :  { %14 = vsyncpa [#allocation4 + $0x1], 0  ;;  %s938_s15 = smov 0   ;;  %s940_s16 = smov 0  }
   0x4   :  { %s942_s17 = smov 0   ;;  %s944_s18 = smov 0  }
   0x5   :  { %s946_s19 = smov 0   ;;  %s948_s20 = smov 0  }
   0x6 LB: > { %s669_s21 = sadd.s32 4294967295, %s891_s20   ;;  %s670_s22 = sadd.s32 4294967294, %s891_s20   ;;  %s891_s20 = sphi %s948_s20, %s20_s20   ;;  %s887_s19 = sphi %s946_s19, %s1354_s19   ;;  %s883_s18 = sphi %s944_s18, %s1353_s18   ;;  %s879_s17 = sphi %s942_s17, %s1352_s17   ;;  %s875_s16 = sphi %s940_s16, %s1351_s16   ;;  %s871_s15 = sphi %s938_s15, %s1350_s15  }
   0x7   : > { %s32_s23 = sadd.s32 1, %s887_s19  ;;  %s41_s24 = sadd.s32 1, %s879_s17 }
   0x8   : > { %p34_p0 = scmp.ge.s32.totalorder %s32_s23, 2  ;;  %p48_p1 = scmp.ne.s32.totalorder %s879_s17, %s875_s16 }
   0x9   : > { %p49_p2 = scmp.eq.s32.totalorder %s891_s20, 0  ;;  %p54_p3 = scmp.ne.s32.totalorder %s875_s16, %s871_s15 }
   0xa   : > { %s1356_s23 = smov (%p34_p0, %s32_s23), 0  ;;  %p55_p5 = scmp.eq.s32.totalorder %s669_s21, 0 }
   0xb   : > { %p979_p4 = por %p49_p2, %p48_p1  ;;  %s36_s26 = ssub.s32 %s887_s19, %s1356_s23 }
   0xc   : > { %p153_p6 = scmp.eq.s32.totalorder %s669_s21, 1  ;;  %p39_p7 = scmp.eq.s32.totalorder %s36_s26, 0 }
   0xd   : > { %p985_p8 = por %p55_p5, %p54_p3  ;;  %p159_p10 = scmp.eq.s32.totalorder %s670_s22, 1 }
   0xe   : > { %p989_p9 = por %p153_p6, %p48_p1  ;;  %p700_p13 = scmp.lt.s32.totalorder %s891_s20, 2 }
   0xf   : > { %s994_s29 = scalar_select %p39_p7, %s879_s17, %s41_s24  }
  0x10   : > { %s1330_s28 = scalar_select %p989_p9, 1, 0 }
  0x11   : > { %p996_p11 = por %p159_p10, %p54_p3  ;;  %s196_s5 = sand.u32 1, %s879_s17  }
  0x12   : > { %s675_s6 = sshll.u32 %s196_s5, 3  ;;  %s686_s7 = sshll.u32 %s887_s19, 7 }
  0x13   : > { %s1331_s30 = scalar_select %p996_p11, 1, 0 }
  0x14   : > { %s1007_s10 = scalar_lea.hbm %s1322_s0, %s686_s7  ;;  %s200_s11 = scalar_lea.vmem [#allocation2], %s675_s6 }
  0x15   : > { %s210_s12 = sshll.u32 %s200_s11, 4  ;;  %p1013_p0 = pnand %p700_p13, %p979_p4  ;;  %s1009_s12 = int_to_ptr.vmem [resolvable:$true] %s210_s12 }
  0x16   : > { %s197_s14 = scalar_lea.sflag [#allocation3], %s196_s5  ;;  %s779_s21 = scalar_lea.hbm %s1007_s10, 128 }
  0x17   : > { %p780_p3 = scmp.ne.s32.totalorder %s1007_s10, %s779_s21  ;;  %p781_p5 = pneg %p1013_p0 }
  0x18   : > { %s784_s25 = scalar_lea.hbm %s1322_s0, 256  ;;  %p785_p4 = scmp.lt.u32.totalorder %s1007_s10, %s1322_s0 }
  0x19   : > { %p782_p6 = pnand %p781_p5, %p780_p3  ;;  %p786_p10 = scmp.lt.u32.totalorder %s784_s25, %s779_s21 }
  0x1a   : > { %p788_p12 = scmp.lt.u32.totalorder %s779_s21, %s1007_s10 }
  0x1b   : > { %p783_p7 = pneg %p782_p6  ;;  %p787_p13 = por %p786_p10, %p785_p4 }
  0x1d   : > { %p789_p1 = por %p788_p12, %p787_p13 }
  0x1f   : > { %p790_p2 = pnand %p789_p1, %p783_p7 }
  0x21   : > { %793 = shalt.err (!%p790_p2)
}
  0x22   : > { %s794_s5 = scalar_lea.vmem %s1009_s12, 128  ;;  %s893_s7 = smov [#allocation2]  }
  0x23   : > { %p795_p3 = scmp.ne.s32.totalorder %s1009_s12, %s794_s5  ;;  %s799_s8 = sshll.u32 %s893_s7, 4  ;;  %s800_s8 = int_to_ptr.vmem [resolvable:$false] %s799_s8 }
  0x24   : > { %s801_s9 = scalar_lea.vmem %s800_s8, 256  ;;  %p802_p9 = scmp.lt.s32.totalorder %s1009_s12, %s800_s8 }
  0x25   : > { %p797_p6 = pnand %p795_p3, %p781_p5  ;;  %p803_p4 = scmp.lt.s32.totalorder %s801_s9, %s794_s5 }
  0x27   : > { %p798_p11 = pneg %p797_p6  ;;  %p804_p10 = por %p803_p4, %p802_p9 }
  0x29   : > { %p805_p12 = pnand %p804_p10, %p798_p11 }
  0x2b   : > { %808 = shalt.err (!%p805_p12)
}
  0x2c   : > { %695 = dma.hbm_to_vmem [thread:$0]  (!%p1013_p0), %s1007_s10, 128, %s1009_s12, %s197_s14  }
  0x2d   : > { %p1333_p1 = scmp.lt.s32.totalorder %s891_s20, 3  ;;  %p1334_p2 = scmp.ge.s32.totalorder %s891_s20, 1 }
  0x2f   : > { %p216_p5 = pnand %p1334_p2, %p1333_p1 }
  0x30   : > { %s1049_s11 = sand.u32 (!%p216_p5), 1, %s875_s16  }
  0x31   : > { %219 = sbr.rel (%p216_p5) target bundleno = 269 (0x10d), region = 36  ;;  %s679_s21 = sshll.u32 (!%p216_p5), %s1049_s11, 3 }
  0x32   : > { %s222_s22 = scalar_lea.sflag (!%p216_p5), [#allocation3], %s1049_s11  ;;  %s225_s13 = scalar_lea.vmem (!%p216_p5), [#allocation2], %s679_s21 }
  0x38   : > { %862 = dma.done.wait (%p985_p8), %s222_s22, 128  }
  0x39   : > { %864 = vsyncadd (%p985_p8), %s222_s22, 4294967168  ;;  %v894_v0 = vmov 2   ;;  %v895_v1 = vmov 0   ;;  %v267_v2 = vld [vmem:[%s1323_s1] sm:$0xf]  ;;  %v896_v3 = vmov 4   ;;  %v270_v17 = vlaneseq }
  0x3a   : > { %770 = vset.pattern.permute.xlu1 %v894_v0  ;;  %768 = vset.pattern.permute.xlu0 %v895_v1  ;;  %v897_v4 = vmov 1   ;;  %v1063_v5 = vld [vmem:[%s225_s13] sm:$0xff]  ;;  %v898_v6 = vmov 3   ;;  %s899_s27 = smov 17   ;;  %v900_v8 = vmov 5   ;;  %s901_s14 = smov 16  }
  0x3b   : > { %381 = vperm.xlu1 %770, %v267_v2   ;;  %318 = vperm.xlu0 %768, %v267_v2   ;;  %v280_v7 = vcombine.high %v1063_v5, %v1063_v5  ;;  %v902_v9 = vmov 7   ;;  %s903_s24 = smov 15   ;;  %v904_v10 = vmov 6   ;;  %s905_s25 = smov 1   ;;  %v909_v11 = vmov 8  }
  0x3c   : > { %s906_s26 = smov 127   ;;  %s907_s6 = smov 113   ;;  %v268_v12 = vld [vmem:[%s1324_s2] sm:$0xf]  ;;  %v291_v21 = vshrl.u32 %v270_v17, 7  ;;  %v1096_v29 = vand.u32 127, %v270_v17 }
  0x3d   : > { %s908_s5 = smov 112   ;;  %s910_s9 = smov 111   ;;  %v269_v20 = vld [vmem:[%s1325_s3] sm:$0x3]  ;;  %v911_v38 = vmov 839922192  }
  0x3e   : > { %vm277_vm0 = vcmp.ge.s32.totalorder %v269_v20, 1  ;;  %vm278_vm1 = vcmp.le.s32.totalorder %v269_v20, 14  ;;  %v1092_v23 = vsub.s32 0, %v291_v21  ;;  %v296_v27 = vsub.s32 1, %v291_v21  ;;  %s687_s10 = sshll.u32 %s883_s18, 7  ;;  %s257_s12 = scalar_lea.vmem [#allocation5], %s679_s21 }
  0x3f   : > { %771 = vset.pattern.permute.xlu1 %v896_v3  ;;  %769 = vset.pattern.permute.xlu0 %v897_v4  ;;  %v289_v24 = vsel %vm277_vm0, 1, %v895_v1  ;;  %v353_v26 = vsel %vm278_vm1, 1, %v895_v1  ;;  %vm273_vm2 = vcmp.ge.s32.totalorder %v1096_v29, 16  ;;  %v411_v39 = vunpack.c.l.s4 %v911_v38  ;;  %p1347_p9 = scmp.ne.s32.totalorder %s1330_s28, 0  ;;  %s912_s18 = smov [#allocation5]  }
  0x40   : > { %408 = vperm.xlu1 %771, %v267_v2   ;;  %339 = vperm.xlu0 %769, %v267_v2   ;;  %v1099_v30 = vrot.slane %v289_v24, %v1092_v23  ;;  %v1102_v31 = vrot.slane %v353_v26, %v1092_v23  ;;  %v1104_v32 = vrot.slane %v289_v24, %v296_v27  ;;  %v1128_v42 = vadd.s32 128, %v1096_v29  ;;  %s813_s21 = sshll.u32 %s912_s18, 4  ;;  %s814_s21 = int_to_ptr.vmem [resolvable:$false] %s813_s21 }
  0x41   : > { %v1108_v35 = vrot.slane %v353_v26, %v296_v27  ;;  %v412_v46 = vunpack.c.0.s8 %v411_v39  ;;  %vm329_vm9 = vcmp.lt.s32.totalorder %v1096_v29, 16  ;;  %vm286_vm11 = vcmp.lt.s32.totalorder %v1096_v29, 17 }
  0x42   : > { %vm298_vm3 = vcmp.ne.s32.totalorder %v1099_v30, 0  ;;  %vm362_vm4 = vcmp.ne.s32.totalorder %v1102_v31, 0  ;;  %vm299_vm5 = vcmp.ne.s32.totalorder %v1104_v32, 0  ;;  %vm276_vm10 = vcmp.lt.s32.totalorder %v1128_v42, 240 }
  0x43   : > { %vm300_vm6 = vmand %vm273_vm2, %vm298_vm3  ;;  %vm363_vm7 = vcmp.ne.s32.totalorder %v1108_v35, 0  ;;  %v303_v41 = vsel %vm299_vm5, 1, %v895_v1  ;;  %vm350_vm12 = vcmp.lt.s32.totalorder %v1096_v29, 15  ;;  %v415_v54 = vsub.s32 %v412_v46, %v291_v21 }
  0x44   : > { %772 = vset.pattern.permute.xlu1 %v898_v6  ;;  %282 = vrot.lane.b32.xlu0 %v1063_v5, %s899_s27  ;;  %vm364_vm8 = vmand %vm273_vm2, %vm362_vm4  ;;  %v302_v40 = vsel %vm300_vm6, 1, %v895_v1  ;;  %v367_v44 = vsel %vm363_vm7, 1, %v895_v1  ;;  %v311_v48 = vrot.slane %v303_v41, %v1092_v23  ;;  %vm392_vm15 = vcmp.lt.s32.totalorder %v1096_v29, 1 }
  0x45   : > { %400 = vperm.xlu1 %772, %v267_v2   ;;  %773 = vset.pattern.permute.xlu0 %v900_v8  ;;  %v366_v43 = vsel %vm364_vm8, 1, %v895_v1  ;;  %v307_v47 = vrot.slane %v302_v40, %v1092_v23  ;;  %v375_v51 = vrot.slane %v367_v44, %v1092_v23  ;;  %vm451_vm0 = vmand %vm276_vm10, %vm299_vm5  ;;  %vm395_vm8 = vcmp.eq.s32.totalorder %v1099_v30, 1 }
  0x46   : > { %v371_v50 = vrot.slane %v366_v43, %v1092_v23  ;;  %vm1152_vm14 = vcmp.eq.s32.totalorder %v311_v48, 1  ;;  %vm431_vm5 = vcmp.eq.s32.totalorder %v1102_v31, 1 }
  0x47   : > { %vm1148_vm13 = vcmp.eq.s32.totalorder %v307_v47, 1  ;;  %vm1165_vm6 = vcmp.eq.s32.totalorder %v375_v51, 1 }
  0x48   : > { %325 = vrot.lane.b32.xlu0 %v1063_v5, %s901_s14  ;;  %vm1161_vm1 = vcmp.eq.s32.totalorder %v371_v50, 1 }
  0x49   : > { %284 = vrot.lane.b32.xlu1 %v280_v7, %s899_s27  ;;  %s555_s27 = sshll.u32 %s257_s12, 4  ;;  %s1275_s27 = int_to_ptr.vmem [resolvable:$true] %s555_s27 }
  0x4a   : > { %775 = vset.pattern.permute.xlu1 %v902_v9  ;;  %p816_p7 = scmp.lt.s32.totalorder %s1275_s27, %s814_s21 }
  0x4c   : > { %346 = vrot.lane.b32.xlu0 %v1063_v5, %s903_s24 }
  0x4d   : > { %327 = vrot.lane.b32.xlu1 %v280_v7, %s901_s14 }
  0x50   : > { %436 = vperm.xlu0 %773, %v267_v2  }
  0x51   : > { %348 = vrot.lane.b32.xlu1 %v280_v7, %s903_s24 }
  0x54   : > { %774 = vset.pattern.permute.xlu0 %v904_v10 }
  0x55   : > { %388 = vrot.lane.b32.xlu1 %v1063_v5, %s905_s25  ;;  %467 = vperm.xlu0 %774, %v267_v2  }
  0x59   : > { %390 = vrot.lane.b32.xlu1 %v280_v7, %s905_s25  ;;  %426 = vrot.lane.b32.xlu0 %v280_v7, %s906_s26  ;;  %s1273_s25 = scalar_lea.hbm %s1326_s4, %s687_s10 }
  0x5a   : > { %777 = vset.pattern.permute.xlu0 %v895_v1 }
  0x5d   : > { %488 = vperm.xlu1 %775, %v267_v2   ;;  %443 = vrot.lane.b32.xlu0 %v1063_v5, %s907_s6 }
  0x61   : > { %424 = vrot.lane.b32.xlu1 %v1063_v5, %s906_s26  ;;  %474 = vrot.lane.b32.xlu0 %v1063_v5, %s908_s5  ;;  %s539_s26 = scalar_lea.sflag [#allocation4], %s1049_s11 }
  0x62   : > { %776 = vset.pattern.permute.xlu1 %v909_v11 }
  0x65   : > { %519 = vperm.xlu1 %776, %v267_v2   ;;  %528 = vperm.xlu0 %777, %v268_v12   ;;  %v452_v2 = vsel %vm298_vm3, 1, %v895_v1  ;;  %vm428_vm3 = vcmp.lt.s32.totalorder %v1096_v29, 127 }
  0x66   : > { %v457_v17 = vrot.slane %v452_v2, %v1092_v23 }
  0x69   : > { %445 = vrot.lane.b32.xlu1 %v280_v7, %s907_s6  ;;  %s809_s6 = scalar_lea.vmem %s1275_s27, 128 }
  0x6a   : > { %p810_p8 = scmp.ne.s32.totalorder %s1275_s27, %s809_s6 }
  0x6c   : > { %p811_p11 = pnand %p810_p8, %p1347_p9 }
  0x6d   : > { %476 = vrot.lane.b32.xlu1 %v280_v7, %s908_s5  ;;  %s815_s5 = scalar_lea.vmem %s814_s21, 256 }
  0x6e   : > { %p812_p0 = pneg %p811_p11  ;;  %p817_p13 = scmp.lt.s32.totalorder %s815_s5, %s809_s6 }
  0x70   : > { %p818_p3 = por %p817_p13, %p816_p7 }
  0x71   : > { %495 = vrot.lane.b32.xlu1 %v1063_v5, %s910_s9 }
  0x72   : > { %p819_p6 = pnand %p818_p3, %p812_p0 }
  0x75   : > { %497 = vrot.lane.b32.xlu1 %v280_v7, %s910_s9  ;;  %v453_v7 = vsel %vm451_vm0, 1, %v895_v1 }
  0x76   : > { %v461_v24 = vrot.slane %v453_v7, %v1092_v23 }
  0xba   : > { %v1079_v13 = vpop.permute.xlu1 %381  ;;  %v1081_v14 = vpop.permute.xlu0 %318 }
  0xbf   : > { %v1083_v15 = vpop.permute.xlu1 %408  ;;  %v1085_v16 = vpop.permute.xlu0 %339 }
  0xc0   : > { %v416_v27 = vrot.slane %v1083_v15, %v415_v54 }
  0xc2   : > { %v418_v47 = vmul.f32 %v416_v27, %v1063_v5 }
  0xc3   : > { %v283_v19 = vpop.permute.xlu0 %282 }
  0xc4   : > { %v1087_v18 = vpop.permute.xlu1 %400 }
  0xc7   : > { %v326_v25 = vpop.permute.xlu0 %325 }
  0xc8   : > { %v285_v22 = vpop.permute.xlu1 %284 }
  0xc9   : > { %v288_v57 = vsel %vm286_vm11, %v285_v22, %v283_v19  ;;  %v287_v61 = vsel %vm286_vm11, %v283_v19, %v285_v22  ;;  %vm503_vm11 = vmand %vm276_vm10, %vm363_vm7  ;;  %vm478_vm7 = vcmp.lt.s32.totalorder %v1096_v29, 112 }
  0xca   : > { %v314_v8 = vsel %vm1148_vm13, %v288_v57, 0.0  ;;  %v315_v10 = vsel %vm1152_vm14, %v287_v61, 0.0  ;;  %vm1221_vm13 = vcmp.eq.s32.totalorder %v457_v17, 1  ;;  %vm1225_vm14 = vcmp.eq.s32.totalorder %v461_v24, 1 }
  0xcb   : > { %v347_v33 = vpop.permute.xlu0 %346  ;;  %v505_v46 = vsel %vm503_vm11, 1, %v895_v1 }
  0xcc   : > { %v328_v28 = vpop.permute.xlu1 %327  ;;  %v513_v58 = vrot.slane %v505_v46, %v1092_v23 }
  0xcd   : > { %v331_v53 = vsel %vm329_vm9, %v328_v28, %v326_v25  ;;  %v330_v3 = vsel %vm329_vm9, %v326_v25, %v328_v28  ;;  %v321_v25 = vmul.f32 %v1081_v14, %v314_v8  ;;  %vm447_vm9 = vcmp.lt.s32.totalorder %v1096_v29, 113 }
  0xce   : > { %v336_v62 = vsel %vm273_vm2, %v331_v53, 0.0  ;;  %vm396_vm2 = vcmp.eq.s32.totalorder %v1104_v32, 1  ;;  %v343_v19 = vmul.f32 %v1085_v16, %v330_v3  ;;  %vm515_vm0 = vcmp.eq.s32.totalorder %v513_v58, 1 }
  0xcf   : > { %v1116_v37 = vpop.permute.xlu0 %436  ;;  %v342_v11 = vmul.f32 %v1085_v16, %v336_v62  ;;  %v322_v16 = vmul.f32 %v1081_v14, %v315_v10 }
  0xd0   : > { %v349_v34 = vpop.permute.xlu1 %348 }
  0xd1   : > { %v352_v60 = vsel %vm350_vm12, %v349_v34, %v347_v33  ;;  %v351_v4 = vsel %vm350_vm12, %v347_v33, %v349_v34  ;;  %v344_v30 = vadd.f32 %v342_v11, %v321_v25  ;;  %v345_v14 = vadd.f32 %v343_v19, %v322_v16 }
  0xd2   : > { %v378_v9 = vsel %vm1161_vm1, %v352_v60, 0.0  ;;  %v379_v20 = vsel %vm1165_vm6, %v351_v4, 0.0  ;;  %vm432_vm12 = vcmp.eq.s32.totalorder %v1108_v35, 1  ;;  %v420_v35 = vcombine.high %v418_v47, %v418_v47 }
  0xd3   : > { %v384_v26 = vmul.f32 %v1079_v13, %v378_v9  ;;  %v385_v34 = vmul.f32 %v1079_v13, %v379_v20 }
  0xd4   : > { %v389_v36 = vpop.permute.xlu1 %388  ;;  %v1137_v49 = vpop.permute.xlu0 %467 }
  0xd5   : > { %v386_v39 = vadd.f32 %v384_v26, %v344_v30 }
  0xd8   : > { %v391_v45 = vpop.permute.xlu1 %390  ;;  %v427_v63 = vpop.permute.xlu0 %426 }
  0xd9   : > { %v394_v6 = vsel %vm392_vm15, %v391_v45, %v389_v36  ;;  %v393_v12 = vsel %vm392_vm15, %v389_v36, %v391_v45  ;;  %v504_v45 = vsel %vm362_vm4, 1, %v895_v1  ;;  %vm499_vm4 = vcmp.lt.s32.totalorder %v1096_v29, 111 }
  0xda   : > { %v397_v21 = vsel %vm395_vm8, %v394_v6, 0.0  ;;  %v398_v28 = vsel %vm396_vm2, %v393_v12, 0.0  ;;  %v509_v57 = vrot.slane %v504_v45, %v1092_v23 }
  0xdb   : > { %v403_v36 = vmul.f32 %v1087_v18, %v397_v21  ;;  %v404_v40 = vmul.f32 %v1087_v18, %v398_v28  ;;  %v387_v18 = vadd.f32 %v385_v34, %v345_v14 }
  0xdc   : > { %v1144_v52 = vpop.permute.xlu1 %488  ;;  %v444_v33 = vpop.permute.xlu0 %443  ;;  %vm514_vm15 = vcmp.eq.s32.totalorder %v509_v57, 1 }
  0xdd   : > { %v405_v48 = vadd.f32 %v403_v36, %v386_v39  ;;  %v406_v56 = vadd.f32 %v404_v40, %v387_v18 }
  0xdf   : > { %v422_v59 = vadd.f32 %v418_v47, %v405_v48  ;;  %v423_v2 = vadd.f32 %v420_v35, %v406_v56 }
  0xe0   : > { %v425_v0 = vpop.permute.xlu1 %424  ;;  %v475_v54 = vpop.permute.xlu0 %474 }
  0xe1   : > { %v429_v38 = vsel %vm428_vm3, %v425_v0, %v427_v63  ;;  %v430_v41 = vsel %vm428_vm3, %v427_v63, %v425_v0 }
  0xe2   : > { %v433_v44 = vsel %vm431_vm5, %v429_v38, 0.0  ;;  %v434_v51 = vsel %vm432_vm12, %v430_v41, 0.0 }
  0xe3   : > { %v439_v31 = vmul.f32 %v1116_v37, %v433_v44  ;;  %v440_v60 = vmul.f32 %v1116_v37, %v434_v51 }
  0xe4   : > { %v1201_v22 = vpop.permute.xlu1 %519  ;;  %v529_v20 = vpop.permute.xlu0 %528 }
  0xe5   : > { %v441_v3 = vadd.f32 %v439_v31, %v422_v59  ;;  %v442_v23 = vadd.f32 %v440_v60, %v423_v2 }
  0xe8   : > { %v446_v13 = vpop.permute.xlu1 %445 }
  0xe9   : > { %v448_v43 = vsel %vm447_vm9, %v444_v33, %v446_v13  ;;  %v449_v50 = vsel %vm447_vm9, %v446_v13, %v444_v33 }
  0xea   : > { %v464_v53 = vsel %vm1221_vm13, %v448_v43, 0.0  ;;  %v465_v5 = vsel %vm1225_vm14, %v449_v50, 0.0 }
  0xeb   : > { %v470_v61 = vmul.f32 %v1137_v49, %v464_v53  ;;  %v471_v4 = vmul.f32 %v1137_v49, %v465_v5 }
  0xec   : > { %v477_v55 = vpop.permute.xlu1 %476 }
  0xed   : > { %v480_v1 = vsel %vm478_vm7, %v477_v55, %v475_v54  ;;  %v479_v62 = vsel %vm478_vm7, %v475_v54, %v477_v55  ;;  %v472_v6 = vadd.f32 %v470_v61, %v441_v3  ;;  %v473_v42 = vadd.f32 %v471_v4, %v442_v23 }
  0xee   : > { %v486_v63 = vsel %vm276_vm10, %v480_v1, 0.0  ;;  %v491_v37 = vmul.f32 %v1144_v52, %v479_v62 }
  0xef   : > { %v492_v7 = vmul.f32 %v1144_v52, %v486_v63 }
  0xf0   : > { %v496_v0 = vpop.permute.xlu1 %495  ;;  %v493_v17 = vadd.f32 %v491_v37, %v472_v6 }
  0xf1   : > { %v494_v19 = vadd.f32 %v492_v7, %v473_v42 }
  0xf4   : > { %v498_v8 = vpop.permute.xlu1 %497 }
  0xf5   : > { %v500_v9 = vsel %vm499_vm4, %v496_v0, %v498_v8  ;;  %v501_v10 = vsel %vm499_vm4, %v498_v8, %v496_v0 }
  0xf6   : > { %v516_v11 = vsel %vm514_vm15, %v500_v9, 0.0  ;;  %v517_v12 = vsel %vm515_vm0, %v501_v10, 0.0 }
  0xf7   : > { %v522_v49 = vmul.f32 %v1201_v22, %v516_v11  ;;  %v523_v29 = vmul.f32 %v1201_v22, %v517_v12 }
  0xf9   : > { %v524_v21 = vadd.f32 %v522_v49, %v493_v17  ;;  %v525_v24 = vadd.f32 %v523_v29, %v494_v19 }
  0xfb   : > { %v531_v52 = vadd.f32 %v529_v20, %v524_v21  ;;  %v532_v25 = vadd.f32 %v529_v20, %v525_v24 }
  0xfd   : > { %v535_v26 = vcombine.low %v531_v52, %v532_v25 }
  0xff   : > { %537 = vst [vmem:[%s257_s12] sm:$0xff] %v535_v26 }
 0x100   : > { %822 = shalt.err (!%p819_p6)
}
 0x101   : > { %s823_s11 = scalar_lea.hbm %s1273_s25, 128  ;;  %s827_s9 = scalar_lea.hbm %s1326_s4, 256 }
 0x102   : > { %p824_p4 = scmp.ne.s32.totalorder %s1273_s25, %s823_s11  ;;  %p828_p1 = scmp.lt.u32.totalorder %s1273_s25, %s1326_s4 }
 0x103   : > { %p829_p2 = scmp.lt.u32.totalorder %s827_s9, %s823_s11  ;;  %p831_p8 = scmp.lt.u32.totalorder %s823_s11, %s1273_s25 }
 0x104   : > { %p825_p10 = pnand %p824_p4, %p1347_p9 }
 0x105   : > { %p830_p5 = por %p829_p2, %p828_p1 }
 0x106   : > { %p826_p12 = pneg %p825_p10 }
 0x107   : > { %p832_p11 = por %p831_p8, %p830_p5 }
 0x109   : > { %p833_p0 = pnand %p832_p11, %p826_p12 }
 0x10b   : > { %836 = shalt.err (!%p833_p0)
}
 0x10c   : > { %690 = dma.vmem_to_hbm [thread:$0]  (%p1347_p9), %s1275_s27, 128, %s1273_s25, %s539_s26  }
 0x10d PF: > { %s567_s10 = sand.u32 1, %s871_s15   ;;  %p1348_p7 = scmp.ne.s32.totalorder %s1331_s30, 0 }
 0x10e   : > { %p1349_p13 = scmp.ge.s32.totalorder %s891_s20, 2  ;;  %s568_s12 = scalar_lea.sflag [#allocation4], %s567_s10 }
 0x110   : > { %p697_p3 = pnand %p1349_p13, %p1348_p7 }
 0x112   : > { %866 = dma.done.wait (!%p697_p3), %s568_s12, 128  }
 0x113   : > { %868 = vsyncadd (!%p697_p3), %s568_s12, 4294967168  ;;  %s20_s20 = sadd.s32 1, %s891_s20   ;;  %s1350_s15 = smov %s875_s16 }
 0x114   : > { %p17_p6 = scmp.ge.s32.totalorder %s20_s20, 4   ;;  %s1351_s16 = smov %s879_s17 }
 0x115   : > { %s1352_s17 = smov %s994_s29  ;;  %s1353_s18 = smov %s887_s19 }
 0x116   : > { %s1354_s19 = smov %s1356_s23  ;;  %19 = sbr.rel (!%p17_p6) target bundleno = 6 (0x6), region = 87 }
 0x11d   :  { %573 = vsyncpa [#allocation3], 1 }
 0x11e   :  { %575 = vsyncpa [#allocation3 + $0x1], 1 }
 0x11f   :  { %576 = vsyncpa [#allocation4], 1 }
 0x120   :  { %578 = vsyncpa [#allocation4 + $0x1], 1 }

</bundles_post_ra>
